<compile_context>
chip_gen: v5e
topology: v5e:2x2
jax: 0.10.0
libtpu: 0.0.40
codegen_flags: <defaults>
</compile_context>

<pallas_src>
import math

import numpy as np
import jax
import jax.numpy as jnp
from jax.experimental import pallas as pl
from jax.experimental.pallas import tpu as pltpu


_BN_EPS = 1e-5


# ----------------------------------------------------------------------------
# The fused trainer kernel
# ----------------------------------------------------------------------------
def _trainer_kernel(t_ref, sab_ref, s1m_ref,           # SMEM: t, schedules
                    x0c_ref, nsc_ref,                   # VMEM (C, N*L): [x0;cond], [noise;0]
                    w1, b1, g1, be1,                    # conv1 + BN1
                    w2, b2, g2, be2,                    # conv2 + BN2
                    w3, b3, g3, be3,                    # conv3 + BN3
                    w4, b4,                             # conv4 (no BN/ELU)
                    pred_ref, loss_ref):                # outputs
    C, NL = x0c_ref.shape
    N = t_ref.shape[0]
    L = NL // N
    Cx = pred_ref.shape[0]
    KC = w1.shape[1]
    K = KC // C
    P = K // 2

    # ---- hoisted index helpers (shared by every conv stage) -----------------
    # within-batch lane position, built by lane-concat of N aligned (1, L) iotas
    pos = jnp.concatenate(
        [jax.lax.broadcasted_iota(jnp.int32, (1, L), 1)] * N, axis=1)   # (1, NL)
    masks = []
    for k in range(K):
        s = P - k
        if s == 0:
            masks.append(None)
        elif s > 0:
            masks.append(pos >= s)           # zero first s positions of each batch
        else:
            masks.append(pos < (L + s))      # zero last |s| positions of each batch

    # ---- q-sample: x_t = sqrt(ab[t]) * x_0 + sqrt(1-ab[t]) * noise ----------
    # `extract` == per-batch scalar gather from SMEM, expanded to lane vectors.
    ones_l = jnp.ones((1, L), jnp.float32)
    ca = jnp.concatenate([sab_ref[t_ref[b]] * ones_l for b in range(N)], axis=1)
    cb = jnp.concatenate([s1m_ref[t_ref[b]] * ones_l for b in range(N)], axis=1)
    x0c = x0c_ref[...]                                                   # (C, NL)
    nsc = nsc_ref[...]                                                   # (C, NL)
    row = jax.lax.broadcasted_iota(jnp.int32, (C, NL), 0)
    # rows [0, Cx) hold x_0 (-> x_t); rows [Cx, C) hold the condition unchanged.
    h = jnp.where(row < Cx, ca * x0c + cb * nsc, x0c)                    # (C, NL)

    # ---- Conv1d(K, pad=K//2): roll-based taps + ONE MXU matmul per stage ----
    def conv(act, w_ref, b_ref):
        taps = []
        for k in range(K):
            s = P - k
            if s == 0:
                taps.append(act)
            else:
                rolled = pltpu.roll(act, shift=s % NL, axis=1)           # XLU lane rotate
                taps.append(jnp.where(masks[k], rolled, 0.0))
        xk = jnp.concatenate(taps, axis=0)                               # (K*C, NL), 8-row aligned
        y = jnp.dot(w_ref[...], xk, preferred_element_type=jnp.float32)  # (Cout, NL)
        return y + b_ref[...]

    # ---- train-mode BatchNorm1d (per-channel row stats over N*L) + ELU ------
    def bn_elu(y, g_ref, be_ref):
        inv = 1.0 / float(NL)
        s1 = jnp.sum(y, axis=1, keepdims=True)                           # (Cout, 1)
        s2 = jnp.sum(y * y, axis=1, keepdims=True)
        mean = s1 * inv
        var = jnp.maximum(s2 * inv - mean * mean, 0.0)                   # biased var, clamped
        scale = g_ref[...] * jax.lax.rsqrt(var + _BN_EPS)
        shift = be_ref[...] - mean * scale
        xn = y * scale + shift
        return jnp.where(xn > 0.0, xn, jnp.exp(xn) - 1.0)                # ELU(alpha=1)

    # ---- stand-in noise-prediction model (activations never leave VMEM) -----
    a = bn_elu(conv(h, w1, b1), g1, be1)
    a = bn_elu(conv(a, w2, b2), g2, be2)
    a = bn_elu(conv(a, w3, b3), g3, be3)
    pred = conv(a, w4, b4)                                               # (Cx, NL)

    # ---- MSE loss (the module's actual return value) -------------------------
    diff = pred - nsc[0:Cx, :]
    sq = diff * diff
    sse = jnp.sum(sq, axis=1, keepdims=True)
    sse = jnp.sum(sse, axis=0, keepdims=True)                            # (1, 1)
    loss_ref[...] = sse * (1.0 / float(Cx * NL))
    pred_ref[...] = pred                                                 # verification only


# ----------------------------------------------------------------------------
# Wrapper: GaussianDiffusionTrainer.forward
# ----------------------------------------------------------------------------
def gaussian_diffusion_trainer_forward(params, sab, s1m, x0, condition, t, noise):
    """x0 / condition / noise are NCL (PyTorch layout); t is (N,) int32.

    Returns (scalar mse loss, model prediction in NCL).
    """
    N, Cx, L = x0.shape
    Cc = condition.shape[1]
    C = Cx + Cc
    NL = N * L
    assert params["w2"].shape[1] == C and params["w4"].shape[1] == C, \
        "stand-in model requires hidden width == Cx + Ccond"

    # channel-major, batch folded into the lane axis: (N, Ch, L) -> (Ch, N*L)
    def to_c_nl(a):
        return jnp.transpose(a, (1, 0, 2)).reshape(a.shape[1], NL)

    x0c = jnp.concatenate([to_c_nl(x0), to_c_nl(condition)], axis=0)      # (C, NL)
    nsc = jnp.concatenate([to_c_nl(noise),
                           jnp.zeros((Cc, NL), jnp.float32)], axis=0)     # (C, NL)

    # Conv weights fused over taps and pre-transposed: (K, Cin, Cout) -> (Cout, K*Cin)
    fuse_w = lambda w: w.reshape(-1, w.shape[-1]).T
    col = lambda v: v.reshape(-1, 1)                                      # -> (Cout, 1)

    flat = (fuse_w(params["w1"]), col(params["b1"]), col(params["g1"]), col(params["be1"]),
            fuse_w(params["w2"]), col(params["b2"]), col(params["g2"]), col(params["be2"]),
            fuse_w(params["w3"]), col(params["b3"]), col(params["g3"]), col(params["be3"]),
            fuse_w(params["w4"]), col(params["b4"]))

    smem = pl.BlockSpec(memory_space=pltpu.MemorySpace.SMEM)
    vmem = pl.BlockSpec(memory_space=pltpu.MemorySpace.VMEM)

    pred_cnl, loss = pl.pallas_call(
        _trainer_kernel,
        out_shape=(jax.ShapeDtypeStruct((Cx, NL), jnp.float32),   # lane-dense pred
                   jax.ShapeDtypeStruct((1, 1), jnp.float32)),    # loss
        in_specs=[smem, smem, smem] + [vmem] * (2 + len(flat)),
        out_specs=(vmem, vmem),
    )(t.astype(jnp.int32), sab, s1m, x0c, nsc, *flat)

    pred = jnp.transpose(pred_cnl.reshape(Cx, N, L), (1, 0, 2))           # (N, Cx, L)
    return loss[0, 0], pred


trainer_forward = jax.jit(gaussian_diffusion_trainer_forward)


# ----------------------------------------------------------------------------
# Diffusion schedule buffers (float64 on host, gathered values used as f32 —
# mirrors the double buffers + .float() of the PyTorch module)
# ----------------------------------------------------------------------------
def make_schedule(beta_1, beta_T, T):
    beta = np.linspace(beta_1, beta_T, T, dtype=np.float64)
    alphas_bar = np.cumprod(1.0 - beta)
    sqrt_alphas_bar = jnp.asarray(np.sqrt(alphas_bar), dtype=jnp.float32)
    sqrt_one_minus = jnp.asarray(np.sqrt(1.0 - alphas_bar), dtype=jnp.float32)
    return sqrt_alphas_bar, sqrt_one_minus


# ----------------------------------------------------------------------------
# Deterministic parameter init for the stand-in model (PyTorch-like fan-in)
# ----------------------------------------------------------------------------
def init_params(key, c_in, hidden, c_out, kernel_size):
    def conv_init(k, cin, cout):
        s = 1.0 / math.sqrt(cin * kernel_size)
        kw, kb = jax.random.split(k)
        w = jax.random.uniform(kw, (kernel_size, cin, cout), jnp.float32, -s, s)
        b = jax.random.uniform(kb, (cout,), jnp.float32, -s, s)
        return w, b

    k1, k2, k3, k4 = jax.random.split(key, 4)
    w1, b1 = conv_init(k1, c_in, hidden)
    w2, b2 = conv_init(k2, hidden, hidden)
    w3, b3 = conv_init(k3, hidden, hidden)
    w4, b4 = conv_init(k4, hidden, c_out)
    ones = lambda c: jnp.ones((c,), jnp.float32)
    zeros = lambda c: jnp.zeros((c,), jnp.float32)
    return dict(w1=w1, b1=b1, g1=ones(hidden), be1=zeros(hidden),
                w2=w2, b2=b2, g2=ones(hidden), be2=zeros(hidden),
                w3=w3, b3=b3, g3=ones(hidden), be3=zeros(hidden),
                w4=w4, b4=b4)


# ----------------------------------------------------------------------------
# Pure-JAX reference (NCL, lax.conv, f32) for the correctness check
# ----------------------------------------------------------------------------
def _reference_forward(params, sab, s1m, x0, condition, t, noise, kernel_size=3):
    P = kernel_size // 2
    ca = sab[t].reshape(-1, 1, 1)
    cb = s1m[t].reshape(-1, 1, 1)
    x_t = ca * x0 + cb * noise
    h = jnp.concatenate([x_t, condition], axis=1)

    def conv(x, w_kio, b):
        w_oik = jnp.transpose(w_kio, (2, 1, 0))
        y = jax.lax.conv_general_dilated(
            x, w_oik, (1,), [(P, P)],
            dimension_numbers=("NCH", "OIH", "NCH"),
            precision=jax.lax.Precision.HIGHEST)
        return y + b.reshape(1, -1, 1)

    def bn(x, g, be):
        m = jnp.mean(x, axis=(0, 2), keepdims=True)
        v = jnp.mean((x - m) ** 2, axis=(0, 2), keepdims=True)
        xn = (x - m) * jax.lax.rsqrt(v + _BN_EPS)
        return xn * g.reshape(1, -1, 1) + be.reshape(1, -1, 1)

    def elu(x):
        return jnp.where(x > 0, x, jnp.exp(x) - 1.0)

    p = params
    h = elu(bn(conv(h, p["w1"], p["b1"]), p["g1"], p["be1"]))
    h = elu(bn(conv(h, p["w2"], p["b2"]), p["g2"], p["be2"]))
    h = elu(bn(conv(h, p["w3"], p["b3"]), p["g3"], p["be3"]))
    pred = conv(h, p["w4"], p["b4"])
    loss = jnp.mean((pred - noise) ** 2)
    return loss, pred


# ----------------------------------------------------------------------------
if __name__ == "__main__":
    key = jax.random.PRNGKey(0)
    N, Cx, Cc, H, L, K = 2, 4, 4, 8, 128, 3      # small; L=128 -> one full lane tile per batch
    T, beta_1, beta_T = 1000, 1e-4, 0.02

    sab, s1m = make_schedule(beta_1, beta_T, T)
    kp, kx, kc, kt, kn = jax.random.split(key, 5)
    params = init_params(kp, Cx + Cc, H, Cx, K)

    x0 = jax.random.normal(kx, (N, Cx, L), jnp.float32)
    condition = jax.random.normal(kc, (N, Cc, L), jnp.float32)
    # GaussianDiffusionTrainer.forward: t ~ U{0..T-1}, noise ~ N(0,1)
    t = jax.random.randint(kt, (N,), 0, T, dtype=jnp.int32)
    noise = jax.random.normal(kn, (N, Cx, L), jnp.float32)

    loss, pred = trainer_forward(params, sab, s1m, x0, condition, t, noise)
    loss, pred = jax.block_until_ready((loss, pred))

    ref_loss, ref_pred = _reference_forward(params, sab, s1m, x0, condition, t, noise, K)
    ref_loss, ref_pred = jax.block_until_ready((ref_loss, ref_pred))

    assert pred.shape == (N, Cx, L)
    assert jnp.allclose(pred, ref_pred, rtol=1e-2, atol=1e-2), \
        f"pred max abs diff {jnp.max(jnp.abs(pred - ref_pred))}"
    assert jnp.allclose(loss, ref_loss, rtol=1e-3, atol=1e-3), \
        f"loss {loss} vs {ref_loss}"
    print("KERNEL_OK")
</pallas_src>

<mosaic_0001>
module attributes {stable_mosaic.version = 11 : i64} {
  func.func @_trainer_kernel(%arg0: memref<2xi32, #tpu.memory_space<smem>>, %arg1: memref<1000xf32, #tpu.memory_space<smem>>, %arg2: memref<1000xf32, #tpu.memory_space<smem>>, %arg3: memref<8x256xf32, #tpu.memory_space<vmem>>, %arg4: memref<8x256xf32, #tpu.memory_space<vmem>>, %arg5: memref<8x24xf32, #tpu.memory_space<vmem>>, %arg6: memref<8x1xf32, #tpu.memory_space<vmem>>, %arg7: memref<8x1xf32, #tpu.memory_space<vmem>>, %arg8: memref<8x1xf32, #tpu.memory_space<vmem>>, %arg9: memref<8x24xf32, #tpu.memory_space<vmem>>, %arg10: memref<8x1xf32, #tpu.memory_space<vmem>>, %arg11: memref<8x1xf32, #tpu.memory_space<vmem>>, %arg12: memref<8x1xf32, #tpu.memory_space<vmem>>, %arg13: memref<8x24xf32, #tpu.memory_space<vmem>>, %arg14: memref<8x1xf32, #tpu.memory_space<vmem>>, %arg15: memref<8x1xf32, #tpu.memory_space<vmem>>, %arg16: memref<8x1xf32, #tpu.memory_space<vmem>>, %arg17: memref<4x24xf32, #tpu.memory_space<vmem>>, %arg18: memref<4x1xf32, #tpu.memory_space<vmem>>, %arg19: memref<4x256xf32, #tpu.memory_space<vmem>>, %arg20: memref<1x1xf32, #tpu.memory_space<vmem>>) attributes {dimension_semantics = [], scalar_prefetch = 0 : i64, scratch_operands = 0 : i64, tpu.core_type = #tpu.core_type<tc>} {
    %0 = tpu.iota {dimensions = array<i32: 1>} : vector<1x128xi32>
    %1 = tpu.concatenate %0, %0 in 1 : vector<1x128xi32>, vector<1x128xi32> -> vector<1x256xi32>
    %c1_i32 = arith.constant 1 : i32
    %2 = vector.broadcast %c1_i32 : i32 to vector<1x256xi32>
    %3 = arith.cmpi sge, %1, %2 : vector<1x256xi32>
    %c127_i32 = arith.constant 127 : i32
    %4 = vector.broadcast %c127_i32 : i32 to vector<1x256xi32>
    %5 = arith.cmpi slt, %1, %4 : vector<1x256xi32>
    %cst = arith.constant 1.000000e+00 : f32
    %6 = vector.broadcast %cst : f32 to vector<1x128xf32>
    %c0 = arith.constant 0 : index
    %7 = memref.load %arg0[%c0] : memref<2xi32, #tpu.memory_space<smem>>
    %8 = arith.index_cast %7 : i32 to index
    %9 = memref.load %arg1[%8] : memref<1000xf32, #tpu.memory_space<smem>>
    %10 = vector.broadcast %9 : f32 to vector<1x128xf32>
    %11 = arith.mulf %10, %6 : vector<1x128xf32>
    %c1 = arith.constant 1 : index
    %12 = memref.load %arg0[%c1] : memref<2xi32, #tpu.memory_space<smem>>
    %13 = arith.index_cast %12 : i32 to index
    %14 = memref.load %arg1[%13] : memref<1000xf32, #tpu.memory_space<smem>>
    %15 = vector.broadcast %14 : f32 to vector<1x128xf32>
    %16 = arith.mulf %15, %6 : vector<1x128xf32>
    %17 = tpu.concatenate %11, %16 in 1 : vector<1x128xf32>, vector<1x128xf32> -> vector<1x256xf32>
    %c0_0 = arith.constant 0 : index
    %18 = memref.load %arg0[%c0_0] : memref<2xi32, #tpu.memory_space<smem>>
    %19 = arith.index_cast %18 : i32 to index
    %20 = memref.load %arg2[%19] : memref<1000xf32, #tpu.memory_space<smem>>
    %21 = vector.broadcast %20 : f32 to vector<1x128xf32>
    %22 = arith.mulf %21, %6 : vector<1x128xf32>
    %c1_1 = arith.constant 1 : index
    %23 = memref.load %arg0[%c1_1] : memref<2xi32, #tpu.memory_space<smem>>
    %24 = arith.index_cast %23 : i32 to index
    %25 = memref.load %arg2[%24] : memref<1000xf32, #tpu.memory_space<smem>>
    %26 = vector.broadcast %25 : f32 to vector<1x128xf32>
    %27 = arith.mulf %26, %6 : vector<1x128xf32>
    %28 = tpu.concatenate %22, %27 in 1 : vector<1x128xf32>, vector<1x128xf32> -> vector<1x256xf32>
    %c0_2 = arith.constant 0 : index
    %c0_3 = arith.constant 0 : index
    %29 = vector.load %arg3[%c0_2, %c0_3] : memref<8x256xf32, #tpu.memory_space<vmem>>, vector<8x256xf32>
    %c0_4 = arith.constant 0 : index
    %c0_5 = arith.constant 0 : index
    %30 = vector.load %arg4[%c0_4, %c0_5] : memref<8x256xf32, #tpu.memory_space<vmem>>, vector<8x256xf32>
    %31 = tpu.iota {dimensions = array<i32: 0>} : vector<8x256xi32>
    %c4_i32 = arith.constant 4 : i32
    %32 = vector.broadcast %c4_i32 : i32 to vector<8x256xi32>
    %33 = arith.cmpi slt, %31, %32 : vector<8x256xi32>
    %34 = vector.broadcast %17 : vector<1x256xf32> to vector<8x256xf32>
    %35 = arith.mulf %34, %29 : vector<8x256xf32>
    %36 = vector.broadcast %28 : vector<1x256xf32> to vector<8x256xf32>
    %37 = arith.mulf %36, %30 : vector<8x256xf32>
    %38 = arith.addf %35, %37 : vector<8x256xf32>
    %39 = arith.select %33, %38, %29 : vector<8x256xi1>, vector<8x256xf32>
    %c1_i32_6 = arith.constant 1 : i32
    %40 = tpu.dynamic_rotate %39 by %c1_i32_6 dim 1 : vector<8x256xf32>, i32 -> vector<8x256xf32>
    %cst_7 = arith.constant 0.000000e+00 : f32
    %41 = vector.shape_cast %3 : vector<1x256xi1> to vector<1x256xi1>
    %42 = vector.broadcast %41 : vector<1x256xi1> to vector<8x256xi1>
    %43 = vector.broadcast %cst_7 : f32 to vector<8x256xf32>
    %44 = arith.select %42, %40, %43 : vector<8x256xi1>, vector<8x256xf32>
    %c255_i32 = arith.constant 255 : i32
    %45 = tpu.dynamic_rotate %39 by %c255_i32 dim 1 : vector<8x256xf32>, i32 -> vector<8x256xf32>
    %cst_8 = arith.constant 0.000000e+00 : f32
    %46 = vector.shape_cast %5 : vector<1x256xi1> to vector<1x256xi1>
    %47 = vector.broadcast %46 : vector<1x256xi1> to vector<8x256xi1>
    %48 = vector.broadcast %cst_8 : f32 to vector<8x256xf32>
    %49 = arith.select %47, %45, %48 : vector<8x256xi1>, vector<8x256xf32>
    %50 = tpu.concatenate %44, %39, %49 in 0 : vector<8x256xf32>, vector<8x256xf32>, vector<8x256xf32> -> vector<24x256xf32>
    %c0_9 = arith.constant 0 : index
    %c0_10 = arith.constant 0 : index
    %51 = vector.load %arg5[%c0_9, %c0_10] : memref<8x24xf32, #tpu.memory_space<vmem>>, vector<8x24xf32>
    %cst_11 = arith.constant dense<0.000000e+00> : vector<8x256xf32>
    %52 = tpu.matmul %51, %50, %cst_11 {dimension_numbers = #tpu.dot_dimension_numbers<[1], [0], [0], [1], [0, 0, 1, 1], [], []>} : vector<8x24xf32>, vector<24x256xf32>, vector<8x256xf32> -> vector<8x256xf32>
    %c0_12 = arith.constant 0 : index
    %c0_13 = arith.constant 0 : index
    %53 = vector.load %arg6[%c0_12, %c0_13] : memref<8x1xf32, #tpu.memory_space<vmem>>, vector<8x1xf32>
    %54 = vector.broadcast %53 : vector<8x1xf32> to vector<8x256xf32>
    %55 = arith.addf %52, %54 : vector<8x256xf32>
    %cst_14 = arith.constant dense<0.000000e+00> : vector<8xf32>
    %56 = vector.multi_reduction <add>, %55, %cst_14 [1] : vector<8x256xf32> to vector<8xf32>
    %57 = vector.shape_cast %56 : vector<8xf32> to vector<8x1xf32>
    %58 = arith.mulf %55, %55 : vector<8x256xf32>
    %cst_15 = arith.constant dense<0.000000e+00> : vector<8xf32>
    %59 = vector.multi_reduction <add>, %58, %cst_15 [1] : vector<8x256xf32> to vector<8xf32>
    %60 = vector.shape_cast %59 : vector<8xf32> to vector<8x1xf32>
    %cst_16 = arith.constant 3.906250e-03 : f32
    %61 = vector.broadcast %cst_16 : f32 to vector<8x1xf32>
    %62 = arith.mulf %57, %61 : vector<8x1xf32>
    %cst_17 = arith.constant 3.906250e-03 : f32
    %63 = vector.broadcast %cst_17 : f32 to vector<8x1xf32>
    %64 = arith.mulf %60, %63 : vector<8x1xf32>
    %65 = arith.mulf %62, %62 : vector<8x1xf32>
    %66 = arith.subf %64, %65 : vector<8x1xf32>
    %cst_18 = arith.constant 0.000000e+00 : f32
    %67 = vector.broadcast %cst_18 : f32 to vector<8x1xf32>
    %68 = arith.maximumf %66, %67 : vector<8x1xf32>
    %c0_19 = arith.constant 0 : index
    %c0_20 = arith.constant 0 : index
    %69 = vector.load %arg7[%c0_19, %c0_20] : memref<8x1xf32, #tpu.memory_space<vmem>>, vector<8x1xf32>
    %cst_21 = arith.constant 9.99999974E-6 : f32
    %70 = vector.broadcast %cst_21 : f32 to vector<8x1xf32>
    %71 = arith.addf %68, %70 : vector<8x1xf32>
    %72 = math.rsqrt %71 : vector<8x1xf32>
    %73 = arith.mulf %69, %72 : vector<8x1xf32>
    %c0_22 = arith.constant 0 : index
    %c0_23 = arith.constant 0 : index
    %74 = vector.load %arg8[%c0_22, %c0_23] : memref<8x1xf32, #tpu.memory_space<vmem>>, vector<8x1xf32>
    %75 = arith.mulf %62, %73 : vector<8x1xf32>
    %76 = arith.subf %74, %75 : vector<8x1xf32>
    %77 = vector.broadcast %73 : vector<8x1xf32> to vector<8x256xf32>
    %78 = arith.mulf %55, %77 : vector<8x256xf32>
    %79 = vector.broadcast %76 : vector<8x1xf32> to vector<8x256xf32>
    %80 = arith.addf %78, %79 : vector<8x256xf32>
    %cst_24 = arith.constant 0.000000e+00 : f32
    %81 = vector.broadcast %cst_24 : f32 to vector<8x256xf32>
    %82 = arith.cmpf ogt, %80, %81 : vector<8x256xf32>
    %83 = math.exp %80 : vector<8x256xf32>
    %cst_25 = arith.constant 1.000000e+00 : f32
    %84 = vector.broadcast %cst_25 : f32 to vector<8x256xf32>
    %85 = arith.subf %83, %84 : vector<8x256xf32>
    %86 = arith.select %82, %80, %85 : vector<8x256xi1>, vector<8x256xf32>
    %c1_i32_26 = arith.constant 1 : i32
    %87 = tpu.dynamic_rotate %86 by %c1_i32_26 dim 1 : vector<8x256xf32>, i32 -> vector<8x256xf32>
    %cst_27 = arith.constant 0.000000e+00 : f32
    %88 = vector.shape_cast %3 : vector<1x256xi1> to vector<1x256xi1>
    %89 = vector.broadcast %88 : vector<1x256xi1> to vector<8x256xi1>
    %90 = vector.broadcast %cst_27 : f32 to vector<8x256xf32>
    %91 = arith.select %89, %87, %90 : vector<8x256xi1>, vector<8x256xf32>
    %c255_i32_28 = arith.constant 255 : i32
    %92 = tpu.dynamic_rotate %86 by %c255_i32_28 dim 1 : vector<8x256xf32>, i32 -> vector<8x256xf32>
    %cst_29 = arith.constant 0.000000e+00 : f32
    %93 = vector.shape_cast %5 : vector<1x256xi1> to vector<1x256xi1>
    %94 = vector.broadcast %93 : vector<1x256xi1> to vector<8x256xi1>
    %95 = vector.broadcast %cst_29 : f32 to vector<8x256xf32>
    %96 = arith.select %94, %92, %95 : vector<8x256xi1>, vector<8x256xf32>
    %97 = tpu.concatenate %91, %86, %96 in 0 : vector<8x256xf32>, vector<8x256xf32>, vector<8x256xf32> -> vector<24x256xf32>
    %c0_30 = arith.constant 0 : index
    %c0_31 = arith.constant 0 : index
    %98 = vector.load %arg9[%c0_30, %c0_31] : memref<8x24xf32, #tpu.memory_space<vmem>>, vector<8x24xf32>
    %cst_32 = arith.constant dense<0.000000e+00> : vector<8x256xf32>
    %99 = tpu.matmul %98, %97, %cst_32 {dimension_numbers = #tpu.dot_dimension_numbers<[1], [0], [0], [1], [0, 0, 1, 1], [], []>} : vector<8x24xf32>, vector<24x256xf32>, vector<8x256xf32> -> vector<8x256xf32>
    %c0_33 = arith.constant 0 : index
    %c0_34 = arith.constant 0 : index
    %100 = vector.load %arg10[%c0_33, %c0_34] : memref<8x1xf32, #tpu.memory_space<vmem>>, vector<8x1xf32>
    %101 = vector.broadcast %100 : vector<8x1xf32> to vector<8x256xf32>
    %102 = arith.addf %99, %101 : vector<8x256xf32>
    %cst_35 = arith.constant dense<0.000000e+00> : vector<8xf32>
    %103 = vector.multi_reduction <add>, %102, %cst_35 [1] : vector<8x256xf32> to vector<8xf32>
    %104 = vector.shape_cast %103 : vector<8xf32> to vector<8x1xf32>
    %105 = arith.mulf %102, %102 : vector<8x256xf32>
    %cst_36 = arith.constant dense<0.000000e+00> : vector<8xf32>
    %106 = vector.multi_reduction <add>, %105, %cst_36 [1] : vector<8x256xf32> to vector<8xf32>
    %107 = vector.shape_cast %106 : vector<8xf32> to vector<8x1xf32>
    %cst_37 = arith.constant 3.906250e-03 : f32
    %108 = vector.broadcast %cst_37 : f32 to vector<8x1xf32>
    %109 = arith.mulf %104, %108 : vector<8x1xf32>
    %cst_38 = arith.constant 3.906250e-03 : f32
    %110 = vector.broadcast %cst_38 : f32 to vector<8x1xf32>
    %111 = arith.mulf %107, %110 : vector<8x1xf32>
    %112 = arith.mulf %109, %109 : vector<8x1xf32>
    %113 = arith.subf %111, %112 : vector<8x1xf32>
    %cst_39 = arith.constant 0.000000e+00 : f32
    %114 = vector.broadcast %cst_39 : f32 to vector<8x1xf32>
    %115 = arith.maximumf %113, %114 : vector<8x1xf32>
    %c0_40 = arith.constant 0 : index
    %c0_41 = arith.constant 0 : index
    %116 = vector.load %arg11[%c0_40, %c0_41] : memref<8x1xf32, #tpu.memory_space<vmem>>, vector<8x1xf32>
    %cst_42 = arith.constant 9.99999974E-6 : f32
    %117 = vector.broadcast %cst_42 : f32 to vector<8x1xf32>
    %118 = arith.addf %115, %117 : vector<8x1xf32>
    %119 = math.rsqrt %118 : vector<8x1xf32>
    %120 = arith.mulf %116, %119 : vector<8x1xf32>
    %c0_43 = arith.constant 0 : index
    %c0_44 = arith.constant 0 : index
    %121 = vector.load %arg12[%c0_43, %c0_44] : memref<8x1xf32, #tpu.memory_space<vmem>>, vector<8x1xf32>
    %122 = arith.mulf %109, %120 : vector<8x1xf32>
    %123 = arith.subf %121, %122 : vector<8x1xf32>
    %124 = vector.broadcast %120 : vector<8x1xf32> to vector<8x256xf32>
    %125 = arith.mulf %102, %124 : vector<8x256xf32>
    %126 = vector.broadcast %123 : vector<8x1xf32> to vector<8x256xf32>
    %127 = arith.addf %125, %126 : vector<8x256xf32>
    %cst_45 = arith.constant 0.000000e+00 : f32
    %128 = vector.broadcast %cst_45 : f32 to vector<8x256xf32>
    %129 = arith.cmpf ogt, %127, %128 : vector<8x256xf32>
    %130 = math.exp %127 : vector<8x256xf32>
    %cst_46 = arith.constant 1.000000e+00 : f32
    %131 = vector.broadcast %cst_46 : f32 to vector<8x256xf32>
    %132 = arith.subf %130, %131 : vector<8x256xf32>
    %133 = arith.select %129, %127, %132 : vector<8x256xi1>, vector<8x256xf32>
    %c1_i32_47 = arith.constant 1 : i32
    %134 = tpu.dynamic_rotate %133 by %c1_i32_47 dim 1 : vector<8x256xf32>, i32 -> vector<8x256xf32>
    %cst_48 = arith.constant 0.000000e+00 : f32
    %135 = vector.shape_cast %3 : vector<1x256xi1> to vector<1x256xi1>
    %136 = vector.broadcast %135 : vector<1x256xi1> to vector<8x256xi1>
    %137 = vector.broadcast %cst_48 : f32 to vector<8x256xf32>
    %138 = arith.select %136, %134, %137 : vector<8x256xi1>, vector<8x256xf32>
    %c255_i32_49 = arith.constant 255 : i32
    %139 = tpu.dynamic_rotate %133 by %c255_i32_49 dim 1 : vector<8x256xf32>, i32 -> vector<8x256xf32>
    %cst_50 = arith.constant 0.000000e+00 : f32
    %140 = vector.shape_cast %5 : vector<1x256xi1> to vector<1x256xi1>
    %141 = vector.broadcast %140 : vector<1x256xi1> to vector<8x256xi1>
    %142 = vector.broadcast %cst_50 : f32 to vector<8x256xf32>
    %143 = arith.select %141, %139, %142 : vector<8x256xi1>, vector<8x256xf32>
    %144 = tpu.concatenate %138, %133, %143 in 0 : vector<8x256xf32>, vector<8x256xf32>, vector<8x256xf32> -> vector<24x256xf32>
    %c0_51 = arith.constant 0 : index
    %c0_52 = arith.constant 0 : index
    %145 = vector.load %arg13[%c0_51, %c0_52] : memref<8x24xf32, #tpu.memory_space<vmem>>, vector<8x24xf32>
    %cst_53 = arith.constant dense<0.000000e+00> : vector<8x256xf32>
    %146 = tpu.matmul %145, %144, %cst_53 {dimension_numbers = #tpu.dot_dimension_numbers<[1], [0], [0], [1], [0, 0, 1, 1], [], []>} : vector<8x24xf32>, vector<24x256xf32>, vector<8x256xf32> -> vector<8x256xf32>
    %c0_54 = arith.constant 0 : index
    %c0_55 = arith.constant 0 : index
    %147 = vector.load %arg14[%c0_54, %c0_55] : memref<8x1xf32, #tpu.memory_space<vmem>>, vector<8x1xf32>
    %148 = vector.broadcast %147 : vector<8x1xf32> to vector<8x256xf32>
    %149 = arith.addf %146, %148 : vector<8x256xf32>
    %cst_56 = arith.constant dense<0.000000e+00> : vector<8xf32>
    %150 = vector.multi_reduction <add>, %149, %cst_56 [1] : vector<8x256xf32> to vector<8xf32>
    %151 = vector.shape_cast %150 : vector<8xf32> to vector<8x1xf32>
    %152 = arith.mulf %149, %149 : vector<8x256xf32>
    %cst_57 = arith.constant dense<0.000000e+00> : vector<8xf32>
    %153 = vector.multi_reduction <add>, %152, %cst_57 [1] : vector<8x256xf32> to vector<8xf32>
    %154 = vector.shape_cast %153 : vector<8xf32> to vector<8x1xf32>
    %cst_58 = arith.constant 3.906250e-03 : f32
    %155 = vector.broadcast %cst_58 : f32 to vector<8x1xf32>
    %156 = arith.mulf %151, %155 : vector<8x1xf32>
    %cst_59 = arith.constant 3.906250e-03 : f32
    %157 = vector.broadcast %cst_59 : f32 to vector<8x1xf32>
    %158 = arith.mulf %154, %157 : vector<8x1xf32>
    %159 = arith.mulf %156, %156 : vector<8x1xf32>
    %160 = arith.subf %158, %159 : vector<8x1xf32>
    %cst_60 = arith.constant 0.000000e+00 : f32
    %161 = vector.broadcast %cst_60 : f32 to vector<8x1xf32>
    %162 = arith.maximumf %160, %161 : vector<8x1xf32>
    %c0_61 = arith.constant 0 : index
    %c0_62 = arith.constant 0 : index
    %163 = vector.load %arg15[%c0_61, %c0_62] : memref<8x1xf32, #tpu.memory_space<vmem>>, vector<8x1xf32>
    %cst_63 = arith.constant 9.99999974E-6 : f32
    %164 = vector.broadcast %cst_63 : f32 to vector<8x1xf32>
    %165 = arith.addf %162, %164 : vector<8x1xf32>
    %166 = math.rsqrt %165 : vector<8x1xf32>
    %167 = arith.mulf %163, %166 : vector<8x1xf32>
    %c0_64 = arith.constant 0 : index
    %c0_65 = arith.constant 0 : index
    %168 = vector.load %arg16[%c0_64, %c0_65] : memref<8x1xf32, #tpu.memory_space<vmem>>, vector<8x1xf32>
    %169 = arith.mulf %156, %167 : vector<8x1xf32>
    %170 = arith.subf %168, %169 : vector<8x1xf32>
    %171 = vector.broadcast %167 : vector<8x1xf32> to vector<8x256xf32>
    %172 = arith.mulf %149, %171 : vector<8x256xf32>
    %173 = vector.broadcast %170 : vector<8x1xf32> to vector<8x256xf32>
    %174 = arith.addf %172, %173 : vector<8x256xf32>
    %cst_66 = arith.constant 0.000000e+00 : f32
    %175 = vector.broadcast %cst_66 : f32 to vector<8x256xf32>
    %176 = arith.cmpf ogt, %174, %175 : vector<8x256xf32>
    %177 = math.exp %174 : vector<8x256xf32>
    %cst_67 = arith.constant 1.000000e+00 : f32
    %178 = vector.broadcast %cst_67 : f32 to vector<8x256xf32>
    %179 = arith.subf %177, %178 : vector<8x256xf32>
    %180 = arith.select %176, %174, %179 : vector<8x256xi1>, vector<8x256xf32>
    %c1_i32_68 = arith.constant 1 : i32
    %181 = tpu.dynamic_rotate %180 by %c1_i32_68 dim 1 : vector<8x256xf32>, i32 -> vector<8x256xf32>
    %cst_69 = arith.constant 0.000000e+00 : f32
    %182 = vector.shape_cast %3 : vector<1x256xi1> to vector<1x256xi1>
    %183 = vector.broadcast %182 : vector<1x256xi1> to vector<8x256xi1>
    %184 = vector.broadcast %cst_69 : f32 to vector<8x256xf32>
    %185 = arith.select %183, %181, %184 : vector<8x256xi1>, vector<8x256xf32>
    %c255_i32_70 = arith.constant 255 : i32
    %186 = tpu.dynamic_rotate %180 by %c255_i32_70 dim 1 : vector<8x256xf32>, i32 -> vector<8x256xf32>
    %cst_71 = arith.constant 0.000000e+00 : f32
    %187 = vector.shape_cast %5 : vector<1x256xi1> to vector<1x256xi1>
    %188 = vector.broadcast %187 : vector<1x256xi1> to vector<8x256xi1>
    %189 = vector.broadcast %cst_71 : f32 to vector<8x256xf32>
    %190 = arith.select %188, %186, %189 : vector<8x256xi1>, vector<8x256xf32>
    %191 = tpu.concatenate %185, %180, %190 in 0 : vector<8x256xf32>, vector<8x256xf32>, vector<8x256xf32> -> vector<24x256xf32>
    %c0_72 = arith.constant 0 : index
    %c0_73 = arith.constant 0 : index
    %192 = vector.load %arg17[%c0_72, %c0_73] : memref<4x24xf32, #tpu.memory_space<vmem>>, vector<4x24xf32>
    %cst_74 = arith.constant dense<0.000000e+00> : vector<4x256xf32>
    %193 = tpu.matmul %192, %191, %cst_74 {dimension_numbers = #tpu.dot_dimension_numbers<[1], [0], [0], [1], [0, 0, 1, 1], [], []>} : vector<4x24xf32>, vector<24x256xf32>, vector<4x256xf32> -> vector<4x256xf32>
    %c0_75 = arith.constant 0 : index
    %c0_76 = arith.constant 0 : index
    %194 = vector.load %arg18[%c0_75, %c0_76] : memref<4x1xf32, #tpu.memory_space<vmem>>, vector<4x1xf32>
    %195 = vector.broadcast %194 : vector<4x1xf32> to vector<4x256xf32>
    %196 = arith.addf %193, %195 : vector<4x256xf32>
    %197 = vector.extract_strided_slice %30 {offsets = [0, 0], sizes = [4, 256], strides = [1, 1]} : vector<8x256xf32> to vector<4x256xf32>
    %198 = arith.subf %196, %197 : vector<4x256xf32>
    %199 = arith.mulf %198, %198 : vector<4x256xf32>
    %cst_77 = arith.constant dense<0.000000e+00> : vector<4xf32>
    %200 = vector.multi_reduction <add>, %199, %cst_77 [1] : vector<4x256xf32> to vector<4xf32>
    %201 = vector.shape_cast %200 : vector<4xf32> to vector<4x1xf32>
    %cst_78 = arith.constant dense<0.000000e+00> : vector<1xf32>
    %202 = vector.multi_reduction <add>, %201, %cst_78 [0] : vector<4x1xf32> to vector<1xf32>
    %203 = vector.shape_cast %202 : vector<1xf32> to vector<1x1xf32>
    %cst_79 = arith.constant 9.765625E-4 : f32
    %204 = vector.broadcast %cst_79 : f32 to vector<1x1xf32>
    %205 = arith.mulf %203, %204 : vector<1x1xf32>
    %c0_80 = arith.constant 0 : index
    %c0_81 = arith.constant 0 : index
    %206 = vector.load %arg20[%c0_80, %c0_81] : memref<1x1xf32, #tpu.memory_space<vmem>>, vector<1x1xf32>
    tpu.vector_store %arg20[%c0_80, %c0_81], %205 {strides = array<i32>} : memref<1x1xf32, #tpu.memory_space<vmem>>, vector<1x1xf32>,
    %c0_82 = arith.constant 0 : index
    %c0_83 = arith.constant 0 : index
    %207 = vector.load %arg19[%c0_82, %c0_83] : memref<4x256xf32, #tpu.memory_space<vmem>>, vector<4x256xf32>
    tpu.vector_store %arg19[%c0_82, %c0_83], %196 {strides = array<i32>} : memref<4x256xf32, #tpu.memory_space<vmem>>, vector<4x256xf32>,
    return
  }
}

</mosaic_0001>

<bundles_post_ra>
// kernel: gaussian_diffusion_trainer_forward.1
= control target key start
LH: loop header
LB: loop body
LE: loop exit
PB: predicated region body
PF: predicated region fallthrough
CT: control target
= control target key end

     0   :  { %s1075_s0 = inlined_call_operand.vmem [shape: s32[2], index: 0, kind: input, shape index: {}]   ;;  %s1076_s1 = inlined_call_operand.vmem [shape: f32[1000], index: 1, kind: input, shape index: {}]   ;;  %s1077_s2 = inlined_call_operand.vmem [shape: f32[1000], index: 2, kind: input, shape index: {}]   ;;  %s1078_s3 = inlined_call_operand.vmem [shape: f32[8,256], index: 3, kind: input, shape index: {}]   ;;  %s1079_s4 = inlined_call_operand.vmem [shape: f32[8,256], index: 4, kind: input, shape index: {}]   ;;  %s1080_s5 = inlined_call_operand.vmem [shape: f32[8,24], index: 5, kind: input, shape index: {}]   ;;  %s1081_s6 = inlined_call_operand.vmem [shape: f32[8,1], index: 6, kind: input, shape index: {}]   ;;  %s1082_s7 = inlined_call_operand.vmem [shape: f32[8,1], index: 7, kind: input, shape index: {}]   ;;  %s1083_s8 = inlined_call_operand.vmem [shape: f32[8,1], index: 8, kind: input, shape index: {}]   ;;  %s1084_s9 = inlined_call_operand.vmem [shape: f32[8,24], index: 9, kind: input, shape index: {}]   ;;  %s1085_s10 = inlined_call_operand.vmem [shape: f32[8,1], index: 10, kind: input, shape index: {}]   ;;  %s1086_s11 = inlined_call_operand.vmem [shape: f32[8,1], index: 11, kind: input, shape index: {}]   ;;  %s1087_s12 = inlined_call_operand.vmem [shape: f32[8,1], index: 12, kind: input, shape index: {}]   ;;  %s1088_s13 = inlined_call_operand.vmem [shape: f32[8,24], index: 13, kind: input, shape index: {}]   ;;  %s1089_s14 = inlined_call_operand.vmem [shape: f32[8,1], index: 14, kind: input, shape index: {}]   ;;  %s1090_s15 = inlined_call_operand.vmem [shape: f32[8,1], index: 15, kind: input, shape index: {}]   ;;  %s1091_s16 = inlined_call_operand.vmem [shape: f32[8,1], index: 16, kind: input, shape index: {}]   ;;  %s1092_s17 = inlined_call_operand.vmem [shape: f32[4,24], index: 17, kind: input, shape index: {}]   ;;  %s1093_s18 = inlined_call_operand.vmem [shape: f32[4,1], index: 18, kind: input, shape index: {}]   ;;  %s1094_s19 = inlined_call_operand.hbm [shape: f32[4,256], index: 19, kind: output, shape index: {0}]   ;;  %s1095_s20 = inlined_call_operand.hbm [shape: f32[1,1], index: 20, kind: output, shape index: {1}]  }
   0x1   :  { %1098 = sst [smem:[#allocation15_spill]] %s1075_s0 }
   0x2   :  { %1099 = sst [smem:[#allocation16_spill]] %s1076_s1 }
   0x3   :  { %1100 = sst [smem:[#allocation17_spill]] %s1077_s2 }
   0x4   :  { %1101 = sst [smem:[#allocation18_spill]] %s1078_s3 }
   0x5   :  { %1102 = sst [smem:[#allocation19_spill]] %s1079_s4 }
   0x6   :  { %26 = vsyncpa [#allocation4], 0 }
   0x7   :  { %27 = vsyncpa [#allocation6], 0 }
   0x8   :  { %28 = vsyncpa [#allocation3], 0  ;;  %s1103_s23 = sld [smem:[#allocation16_spill]] }
   0xe   :  { %s44_s24 = sshll.u32 %s1103_s23, 4  ;;  %s45_s24 = int_to_ptr.vmem [resolvable:$true] %s44_s24 }
   0xf   :  { %29 = vsyncpa [#allocation10], 0  ;;  %s1104_s3 = sld [smem:[#allocation15_spill]]  ;;  %s778_s27 = smov [#allocation5]  }
  0x10   :  { %47 = dma.vmem_to_smem %s45_s24, 128, %s778_s27, [#allocation6]  }
  0x11   :  { %s779_s28 = smov [#allocation2]   ;;  %s1105_s30 = sld [smem:[#allocation17_spill]] }
  0x12   :  { %s780_s21 = smov [#allocation7]  }
  0x15   :  { %s35_s26 = sshll.u32 %s1104_s3, 4  ;;  %s36_s26 = int_to_ptr.vmem [resolvable:$true] %s35_s26 }
  0x16   :  { %38 = dma.vmem_to_smem %s36_s26, 16, %s779_s28, [#allocation4]  }
  0x17   :  { %s53_s0 = sshll.u32 %s1105_s30, 4  ;;  %s54_s0 = int_to_ptr.vmem [resolvable:$true] %s53_s0 }
  0x18   :  { %56 = dma.vmem_to_smem %s54_s0, 128, %s780_s21, [#allocation6]  }
  0x19   :  { %770 = dma.done.wait [#allocation4], 16  }
  0x1a   :  { %771 = vsyncadd [#allocation4], 4294967280 }
  0x1b   :  { %772 = dma.done.wait [#allocation6], 256  }
  0x1c   :  { %773 = vsyncadd [#allocation6], 4294967040 }
  0x1d   :  { %101 = sfence }
  0x1e   :  { %s106_s1 = sld [smem:[#allocation2]]  ;;  %v781_v0 = vmov 0   ;;  %v102_v1 = vlaneseq  ;;  %v159_v23 = vld [vmem:[%s1081_s6] sm:$0xff]  ;;  %vm165_vm6 = vcmask 195584   ;;  %s784_s6 = smov [#allocation8]  }
  0x1f   :  { %s626_s22 = sld [smem:[#allocation2 + $0x1]]  ;;  %665 = vset.pattern.permute.xlu2 %v781_v0  ;;  %666 = vset.pattern.permute.xlu1 %v781_v0  ;;  %v158_v37 = vld [vmem:[%s1080_s5] sm:$0xff]  ;;  %s785_s5 = smov [#allocation9]  }
  0x20   :  { %667 = vset.pattern.permute.xlu0 %v781_v0  ;;  %s1106_s27 = sld [smem:[#allocation18_spill]]  ;;  %v121_v6 = vshrl.u32 %v102_v1, 7  ;;  %162 = vperm.xlu2 %665, %v159_v23   ;;  %v925_v24 = vand.u32 127, %v102_v1  ;;  %v222_v62 = vld [vmem:[%s1082_s7] sm:$0xff]  ;;  %s608_s3 = sshll.u32 %s785_s5, 4  ;;  %s609_s3 = int_to_ptr.vmem [resolvable:$true] %s608_s3 }
  0x21   :  { %s1107_s29 = sld [smem:[#allocation19_spill]] }
  0x22   :  { %vm122_vm0 = vcmp.lt.s32.totalorder %v121_v6, 4  ;;  %vm105_vm1 = vcmp.lt.s32.totalorder %v925_v24, 127  ;;  %vm104_vm2 = vcmp.ge.s32.totalorder %v925_v24, 1  ;;  %vm139_vm4 = vcmp.lt.s32.totalorder %v925_v24, 1 }
  0x23   :  { %v153_v27 = vsel %vm105_vm1, 1, %v781_v0  ;;  %v142_v29 = vsel %vm104_vm2, 1, %v781_v0 }
  0x24   :  { %s107_s23 = sld [smem:[#allocation5 + %s106_s1]]  ;;  %v154_v28 = vperm.slane %v153_v27, 0  ;;  %v143_v30 = vperm.slane %v142_v29, 0  ;;  %v278_v29 = vld [vmem:[%s1084_s9] sm:$0xff] }
  0x25   :  { %s112_s24 = sld [smem:[#allocation7 + %s106_s1]] }
  0x26   :  { %s110_s2 = sld [smem:[#allocation5 + %s626_s22]]  ;;  %v116_v3 = vld [vmem:[%s1106_s27] sm:$0xff]  ;;  %v117_v12 = vld [vmem:[%s1106_s27 + $0x8] sm:$0xff]  ;;  %vm931_vm3 = vcmp.eq.s32.totalorder %v154_v28, 1  ;;  %vm944_vm5 = vcmp.eq.s32.totalorder %v143_v30, 1 }
  0x27   :  { %s114_s25 = sld [smem:[#allocation7 + %s626_s22]]  ;;  %v906_v5 = vld [vmem:[%s1107_s29] sm:$0xff]  ;;  %v914_v13 = vld [vmem:[%s1107_s29 + $0x8] sm:$0xff]  ;;  %s782_s22 = smov 1  }
  0x2a   :  { %v108_v2 = vstv %s107_s23  ;;  %s783_s23 = smov 127  }
  0x2b   :  { %v113_v4 = vstv %s112_s24  ;;  %v123_v7 = vperm.slane %v108_v2, 0 }
  0x2c   :  { %v127_v8 = vperm.slane %v113_v4, 0  ;;  %v111_v9 = vstv %s110_s2  ;;  %s599_s2 = sshll.u32 %s1094_s19, 4  ;;  %s610_s19 = sshll.u32 %s1095_s20, 4  ;;  %s600_s2 = int_to_ptr.hbm [resolvable:$true] %s599_s2  ;;  %s611_s19 = int_to_ptr.hbm [resolvable:$true] %s610_s19 }
  0x2d   :  { %v125_v10 = vmul.f32 %v123_v7, %v116_v3  ;;  %v115_v11 = vstv %s114_s25  ;;  %v124_v14 = vperm.slane %v111_v9, 0  ;;  %s597_s25 = sshll.u32 %s784_s6, 4  ;;  %s598_s25 = int_to_ptr.vmem [resolvable:$true] %s597_s25 }
  0x2e   :  { %v129_v15 = vmul.f32 %v127_v8, %v906_v5  ;;  %v128_v16 = vperm.slane %v115_v11, 0 }
  0x2f   :  { %v126_v18 = vmul.f32 %v124_v14, %v117_v12 }
  0x30   :  { %v131_v17 = vadd.f32 %v129_v15, %v125_v10  ;;  %v130_v19 = vmul.f32 %v128_v16, %v914_v13 }
  0x32   :  { %v133_v20 = vsel %vm122_vm0, %v131_v17, %v116_v3  ;;  %v132_v21 = vadd.f32 %v130_v19, %v126_v18  ;;  %v235_v3 = vld [vmem:[%s1083_s8] sm:$0xff] }
  0x33   :  { %135 = vrot.lane.b32.xlu1 %v133_v20, %s782_s22  ;;  %147 = vrot.lane.b32.xlu0 %v133_v20, %s783_s23 }
  0x34   :  { %v134_v22 = vsel %vm122_vm0, %v132_v21, %v117_v12  ;;  %v279_v21 = vld [vmem:[%s1085_s10] sm:$0xff] }
  0x3b   :  { %137 = vrot.lane.b32.xlu1 %v134_v22, %s782_s22  ;;  %149 = vrot.lane.b32.xlu0 %v134_v22, %s783_s23 }
  0x7a   :  { %v163_v40 = vpop.permute.xlu2 %162 }
  0xa5   :  { %v136_v25 = vpop.permute.xlu1 %135  ;;  %v148_v26 = vpop.permute.xlu0 %147 }
  0xad   :  { %v150_v32 = vpop.permute.xlu0 %149  ;;  %v138_v35 = vpop.permute.xlu1 %137 }
  0xae   :  { %v151_v33 = vsel %vm105_vm1, %v148_v26, %v150_v32  ;;  %v152_v34 = vsel %vm105_vm1, %v150_v32, %v148_v26  ;;  %v141_v38 = vsel %vm139_vm4, %v138_v35, %v136_v25  ;;  %v140_v39 = vsel %vm139_vm4, %v136_v25, %v138_v35 }
  0xaf   :  { %627 = vmatpush.msk.msra.mxu0 %vm931_vm3, %v151_v33  ;;  %630 = vmatpush.msk.msra.mxu1 %vm931_vm3, %v152_v34 }
  0xb1   :  { %183 = vmatpush.msra.mxu0 %v133_v20  ;;  %203 = vmatpush.msra.mxu1 %v134_v22 }
  0xb3   :  { %628 = vmatpush.msk.msra.mxu0 %vm944_vm5, %v141_v38  ;;  %631 = vmatpush.msk.msra.mxu1 %vm944_vm5, %v140_v39 }
  0xb4   :  { %629 = vmatmul.msk.f32.vlgmr.msra.gmra.mxu0 %vm165_vm6, %v158_v37  ;;  %632 = vmatmul.msk.f32.vlgmr.msra.gmra.mxu1 %vm165_vm6, %v158_v37 }
 0x131   :  { %v186_v41 = vpop.f32.mrf.mxu0  ;;  %v206_v42 = vpop.f32.mrf.mxu1 }
 0x132   :  { %v187_v43 = vadd.f32 %v186_v41, %v163_v40  ;;  %v207_v44 = vadd.f32 %v206_v42, %v163_v40 }
 0x134   :  { %v209_v45 = vadd.f32 %v207_v44, %v187_v43  ;;  %v212_v46 = vmul.f32 %v187_v43, %v187_v43  ;;  %v213_v47 = vmul.f32 %v207_v44, %v207_v44 }
 0x136   :  { %210 = vadd.xlane.f32.xlu2 %v209_v45  ;;  %v214_v48 = vadd.f32 %v213_v47, %v212_v46 }
 0x138   :  { %215 = vadd.xlane.f32.xlu0 %v214_v48 }
 0x1a9   :  { %v211_v49 = vpop.xlane.xlu2 %210 }
 0x1aa   :  { %v217_v50 = vmul.f32 0.00390625, %v211_v49 }
 0x1ab   :  { %v216_v51 = vpop.xlane.xlu0 %215 }
 0x1ac   :  { %v219_v52 = vmul.f32 %v217_v50, %v217_v50  ;;  %v218_v53 = vmul.f32 0.00390625, %v216_v51 }
 0x1ae   :  { %v220_v54 = vsub.f32 %v218_v53, %v219_v52 }
 0x1b0   :  { %v221_v55 = vmax.f32 %v220_v54, 0.0 }
 0x1b2   :  { %v223_v56 = vadd.f32 1e-05, %v221_v55 }
 0x1b4   :  { %668 = vrsqrt.f32 %v223_v56  ;;  %vm230_vm8 = vweird.f32 %v223_v56 }
 0x1ba   :  { %v669_v57 = vpop.eup %668 }
 0x1bb   :  { %v225_v58 = vmul.f32 %v669_v57, %v223_v56  ;;  %vm231_vm7 = vweird.f32 %v669_v57  ;;  %v341_v56 = vld [vmem:[%s1086_s11] sm:$0xff] }
 0x1bc   :  { %vm232_vm9 = vmor %vm230_vm8, %vm231_vm7 }
 0x1bd   :  { %v226_v59 = vmul.f32 %v669_v57, %v225_v58 }
 0x1bf   :  { %v227_v60 = vmul.f32 0.5, %v226_v59 }
 0x1c1   :  { %v228_v61 = vsub.f32 1.5, %v227_v60  ;;  %v354_v60 = vld [vmem:[%s1087_s12] sm:$0xff] }
 0x1c3   :  { %v229_v63 = vmul.f32 %v669_v57, %v228_v61 }
 0x1c5   :  { %v233_v0 = vsel %vm232_vm9, %v669_v57, %v229_v63  ;;  %v398_v63 = vld [vmem:[%s1089_s14] sm:$0xff] }
 0x1c6   :  { %v234_v1 = vmul.f32 %v233_v0, %v222_v62 }
 0x1c8   :  { %240 = vperm.xlu1 %666, %v234_v1   ;;  %v236_v2 = vmul.f32 %v234_v1, %v217_v50 }
 0x1ca   :  { %v237_v4 = vsub.f32 %v235_v3, %v236_v2 }
 0x1d0   :  { %247 = vperm.xlu1 %666, %v237_v4  }
 0x23a   :  { %v241_v6 = vpop.permute.xlu1 %240 }
 0x23b   :  { %v243_v7 = vmul.f32 %v241_v6, %v187_v43  ;;  %v244_v8 = vmul.f32 %v241_v6, %v207_v44 }
 0x242   :  { %v248_v9 = vpop.permute.xlu1 %247 }
 0x243   :  { %v250_v10 = vadd.f32 %v248_v9, %v243_v7  ;;  %v251_v11 = vadd.f32 %v248_v9, %v244_v8 }
 0x245   :  { %v254_v12 = vmul.f32 1.442695, %v250_v10  ;;  %v256_v14 = vmul.f32 1.442695, %v251_v11  ;;  %vm252_vm10 = vcmp.gt.f32.partialorder %v250_v10, 0.0  ;;  %vm253_vm11 = vcmp.gt.f32.partialorder %v251_v11, 0.0 }
 0x247   :  { %670 = vpow2.f32 %v254_v12 }
 0x248   :  { %672 = vpow2.f32 %v256_v14 }
 0x24d   :  { %v671_v15 = vpop.eup %670 }
 0x24e   :  { %v673_v16 = vpop.eup %672  ;;  %v633_v17 = vadd.f32 -1.0, %v671_v15 }
 0x24f   :  { %v634_v18 = vadd.f32 -1.0, %v673_v16 }
 0x250   :  { %v260_v19 = vsel %vm252_vm10, %v250_v10, %v633_v17 }
 0x251   :  { %v261_v20 = vsel %vm253_vm11, %v251_v11, %v634_v18  ;;  %270 = vrot.lane.b32.xlu1 %v260_v19, %s783_s23 }
 0x252   :  { %264 = vrot.lane.b32.xlu2 %v261_v20, %s782_s22 }
 0x259   :  { %272 = vrot.lane.b32.xlu1 %v261_v20, %s783_s23 }
 0x261   :  { %262 = vrot.lane.b32.xlu1 %v260_v19, %s782_s22 }
 0x269   :  { %282 = vperm.xlu1 %666, %v279_v21  }
 0x2ac   :  { %v265_v27 = vpop.permute.xlu2 %264 }
 0x2c3   :  { %v271_v22 = vpop.permute.xlu1 %270 }
 0x2cb   :  { %v273_v23 = vpop.permute.xlu1 %272 }
 0x2cc   :  { %v274_v25 = vsel %vm105_vm1, %v271_v22, %v273_v23  ;;  %v275_v26 = vsel %vm105_vm1, %v273_v23, %v271_v22  ;;  %v397_v22 = vld [vmem:[%s1088_s13] sm:$0xff] }
 0x2cd   :  { %635 = vmatpush.msk.msra.mxu2 %vm931_vm3, %v274_v25  ;;  %638 = vmatpush.msk.msra.mxu3 %vm931_vm3, %v275_v26 }
 0x2cf   :  { %302 = vmatpush.msra.mxu2 %v260_v19  ;;  %322 = vmatpush.msra.mxu3 %v261_v20 }
 0x2d3   :  { %v263_v28 = vpop.permute.xlu1 %262 }
 0x2d4   :  { %v267_v30 = vsel %vm139_vm4, %v265_v27, %v263_v28  ;;  %v266_v32 = vsel %vm139_vm4, %v263_v28, %v265_v27 }
 0x2d5   :  { %636 = vmatpush.msk.msra.mxu2 %vm944_vm5, %v267_v30  ;;  %639 = vmatpush.msk.msra.mxu3 %vm944_vm5, %v266_v32 }
 0x2d6   :  { %637 = vmatmul.msk.f32.vlgmr.msra.gmra.mxu2 %vm165_vm6, %v278_v29  ;;  %640 = vmatmul.msk.f32.vlgmr.msra.gmra.mxu3 %vm165_vm6, %v278_v29 }
 0x2db   :  { %v283_v33 = vpop.permute.xlu1 %282 }
 0x359   :  { %v305_v34 = vpop.f32.mrf.mxu2  ;;  %v325_v35 = vpop.f32.mrf.mxu3 }
 0x35a   :  { %v306_v37 = vadd.f32 %v305_v34, %v283_v33  ;;  %v326_v38 = vadd.f32 %v325_v35, %v283_v33 }
 0x35c   :  { %v328_v39 = vadd.f32 %v326_v38, %v306_v37  ;;  %v331_v40 = vmul.f32 %v306_v37, %v306_v37  ;;  %v332_v41 = vmul.f32 %v326_v38, %v326_v38 }
 0x35e   :  { %329 = vadd.xlane.f32.xlu0 %v328_v39  ;;  %v333_v42 = vadd.f32 %v332_v41, %v331_v40 }
 0x360   :  { %334 = vadd.xlane.f32.xlu1 %v333_v42 }
 0x3d1   :  { %v330_v43 = vpop.xlane.xlu0 %329 }
 0x3d2   :  { %v336_v44 = vmul.f32 0.00390625, %v330_v43 }
 0x3d3   :  { %v335_v45 = vpop.xlane.xlu1 %334 }
 0x3d4   :  { %v338_v46 = vmul.f32 %v336_v44, %v336_v44  ;;  %v337_v47 = vmul.f32 0.00390625, %v335_v45 }
 0x3d6   :  { %v339_v48 = vsub.f32 %v337_v47, %v338_v46 }
 0x3d8   :  { %v340_v49 = vmax.f32 %v339_v48, 0.0 }
 0x3da   :  { %v342_v50 = vadd.f32 1e-05, %v340_v49 }
 0x3dc   :  { %674 = vrsqrt.f32 %v342_v50  ;;  %vm349_vm13 = vweird.f32 %v342_v50 }
 0x3e2   :  { %v675_v51 = vpop.eup %674 }
 0x3e3   :  { %v344_v52 = vmul.f32 %v675_v51, %v342_v50  ;;  %vm350_vm12 = vweird.f32 %v675_v51  ;;  %v460_v50 = vld [vmem:[%s1090_s15] sm:$0xff] }
 0x3e4   :  { %vm351_vm14 = vmor %vm349_vm13, %vm350_vm12 }
 0x3e5   :  { %v345_v53 = vmul.f32 %v675_v51, %v344_v52 }
 0x3e7   :  { %v346_v54 = vmul.f32 0.5, %v345_v53 }
 0x3e9   :  { %v347_v55 = vsub.f32 1.5, %v346_v54  ;;  %v473_v54 = vld [vmem:[%s1091_s16] sm:$0xff] }
 0x3eb   :  { %v348_v57 = vmul.f32 %v675_v51, %v347_v55 }
 0x3ed   :  { %v352_v58 = vsel %vm351_vm14, %v675_v51, %v348_v57 }
 0x3ee   :  { %v353_v59 = vmul.f32 %v352_v58, %v341_v56 }
 0x3f0   :  { %359 = vperm.xlu0 %667, %v353_v59   ;;  %v355_v61 = vmul.f32 %v353_v59, %v336_v44 }
 0x3f2   :  { %v356_v62 = vsub.f32 %v354_v60, %v355_v61 }
 0x3f4   :  { %366 = vperm.xlu2 %665, %v356_v62  }
 0x3f8   :  { %401 = vperm.xlu0 %667, %v398_v63  }
 0x44e   :  { %v367_v3 = vpop.permute.xlu2 %366 }
 0x462   :  { %v360_v0 = vpop.permute.xlu0 %359 }
 0x463   :  { %v362_v1 = vmul.f32 %v360_v0, %v306_v37  ;;  %v363_v2 = vmul.f32 %v360_v0, %v326_v38 }
 0x465   :  { %v369_v4 = vadd.f32 %v367_v3, %v362_v1  ;;  %v370_v6 = vadd.f32 %v367_v3, %v363_v2 }
 0x467   :  { %v373_v7 = vmul.f32 1.442695, %v369_v4  ;;  %v375_v8 = vmul.f32 1.442695, %v370_v6  ;;  %vm371_vm15 = vcmp.gt.f32.partialorder %v369_v4, 0.0  ;;  %vm372_vm0 = vcmp.gt.f32.partialorder %v370_v6, 0.0 }
 0x469   :  { %676 = vpow2.f32 %v373_v7 }
 0x46a   :  { %678 = vpow2.f32 %v375_v8  ;;  %v402_v26 = vpop.permute.xlu0 %401  ;;  %v517_v8 = vld [vmem:[%s1093_s18] sm:$0xf] }
 0x46f   :  { %v677_v9 = vpop.eup %676 }
 0x470   :  { %v641_v10 = vadd.f32 -1.0, %v677_v9  ;;  %v679_v12 = vpop.eup %678 }
 0x471   :  { %v642_v14 = vadd.f32 -1.0, %v679_v12 }
 0x472   :  { %v379_v11 = vsel %vm371_vm15, %v369_v4, %v641_v10 }
 0x473   :  { %389 = vrot.lane.b32.xlu2 %v379_v11, %s783_s23  ;;  %v380_v15 = vsel %vm372_vm0, %v370_v6, %v642_v14 }
 0x47b   :  { %391 = vrot.lane.b32.xlu2 %v380_v15, %s783_s23 }
 0x483   :  { %381 = vrot.lane.b32.xlu2 %v379_v11, %s782_s22 }
 0x48b   :  { %383 = vrot.lane.b32.xlu2 %v380_v15, %s782_s22 }
 0x4cd   :  { %v390_v16 = vpop.permute.xlu2 %389 }
 0x4d5   :  { %v392_v17 = vpop.permute.xlu2 %391 }
 0x4d6   :  { %v393_v18 = vsel %vm105_vm1, %v390_v16, %v392_v17  ;;  %v394_v19 = vsel %vm105_vm1, %v392_v17, %v390_v16  ;;  %v516_v16 = vld [vmem:[%s1092_s17] sm:$0xf] }
 0x4d7   :  { %643 = vmatpush.msk.msrb.mxu0 %vm931_vm3, %v393_v18  ;;  %646 = vmatpush.msk.msrb.mxu1 %vm931_vm3, %v394_v19 }
 0x4d9   :  { %421 = vmatpush.msrb.mxu0 %v379_v11  ;;  %441 = vmatpush.msrb.mxu1 %v380_v15 }
 0x4dd   :  { %v382_v20 = vpop.permute.xlu2 %381 }
 0x4e5   :  { %v384_v21 = vpop.permute.xlu2 %383 }
 0x4e6   :  { %v386_v23 = vsel %vm139_vm4, %v384_v21, %v382_v20  ;;  %v385_v25 = vsel %vm139_vm4, %v382_v20, %v384_v21 }
 0x4e7   :  { %644 = vmatpush.msk.msrb.mxu0 %vm944_vm5, %v386_v23  ;;  %647 = vmatpush.msk.msrb.mxu1 %vm944_vm5, %v385_v25 }
 0x4e8   :  { %645 = vmatmul.msk.f32.vlgmr.msrb.gmra.mxu0 %vm165_vm6, %v397_v22  ;;  %648 = vmatmul.msk.f32.vlgmr.msrb.gmra.mxu1 %vm165_vm6, %v397_v22 }
 0x565   :  { %v424_v27 = vpop.f32.mrf.mxu0  ;;  %v444_v28 = vpop.f32.mrf.mxu1 }
 0x566   :  { %v425_v29 = vadd.f32 %v424_v27, %v402_v26  ;;  %v445_v30 = vadd.f32 %v444_v28, %v402_v26 }
 0x568   :  { %v447_v32 = vadd.f32 %v445_v30, %v425_v29  ;;  %v450_v33 = vmul.f32 %v425_v29, %v425_v29  ;;  %v451_v34 = vmul.f32 %v445_v30, %v445_v30 }
 0x56a   :  { %448 = vadd.xlane.f32.xlu1 %v447_v32  ;;  %v452_v35 = vadd.f32 %v451_v34, %v450_v33 }
 0x56c   :  { %453 = vadd.xlane.f32.xlu2 %v452_v35 }
 0x5dd   :  { %v449_v37 = vpop.xlane.xlu1 %448 }
 0x5de   :  { %v455_v38 = vmul.f32 0.00390625, %v449_v37 }
 0x5df   :  { %v454_v39 = vpop.xlane.xlu2 %453 }
 0x5e0   :  { %v457_v40 = vmul.f32 %v455_v38, %v455_v38  ;;  %v456_v41 = vmul.f32 0.00390625, %v454_v39 }
 0x5e2   :  { %v458_v42 = vsub.f32 %v456_v41, %v457_v40 }
 0x5e4   :  { %v459_v43 = vmax.f32 %v458_v42, 0.0 }
 0x5e6   :  { %v461_v44 = vadd.f32 1e-05, %v459_v43 }
 0x5e8   :  { %680 = vrsqrt.f32 %v461_v44  ;;  %vm468_vm7 = vweird.f32 %v461_v44 }
 0x5ee   :  { %v681_v45 = vpop.eup %680 }
 0x5ef   :  { %v463_v46 = vmul.f32 %v681_v45, %v461_v44  ;;  %vm469_vm2 = vweird.f32 %v681_v45 }
 0x5f0   :  { %vm470_vm8 = vmor %vm468_vm7, %vm469_vm2 }
 0x5f1   :  { %v464_v47 = vmul.f32 %v681_v45, %v463_v46 }
 0x5f3   :  { %v465_v48 = vmul.f32 0.5, %v464_v47 }
 0x5f5   :  { %v466_v49 = vsub.f32 1.5, %v465_v48 }
 0x5f7   :  { %v467_v51 = vmul.f32 %v681_v45, %v466_v49 }
 0x5f9   :  { %v471_v52 = vsel %vm470_vm8, %v681_v45, %v467_v51 }
 0x5fa   :  { %v472_v53 = vmul.f32 %v471_v52, %v460_v50 }
 0x5fc   :  { %478 = vperm.xlu0 %667, %v472_v53   ;;  %v474_v55 = vmul.f32 %v472_v53, %v455_v38 }
 0x5fe   :  { %v475_v56 = vsub.f32 %v473_v54, %v474_v55 }
 0x600   :  { %485 = vperm.xlu1 %666, %v475_v56  }
 0x66e   :  { %v479_v57 = vpop.permute.xlu0 %478 }
 0x66f   :  { %v481_v58 = vmul.f32 %v479_v57, %v425_v29  ;;  %v482_v59 = vmul.f32 %v479_v57, %v445_v30 }
 0x672   :  { %v486_v60 = vpop.permute.xlu1 %485 }
 0x673   :  { %v488_v61 = vadd.f32 %v486_v60, %v481_v58  ;;  %v489_v62 = vadd.f32 %v486_v60, %v482_v59 }
 0x675   :  { %v492_v63 = vmul.f32 1.442695, %v488_v61  ;;  %v494_v0 = vmul.f32 1.442695, %v489_v62  ;;  %vm490_vm9 = vcmp.gt.f32.partialorder %v488_v61, 0.0  ;;  %vm491_vm10 = vcmp.gt.f32.partialorder %v489_v62, 0.0 }
 0x677   :  { %682 = vpow2.f32 %v492_v63 }
 0x678   :  { %684 = vpow2.f32 %v494_v0 }
 0x67d   :  { %v683_v1 = vpop.eup %682 }
 0x67e   :  { %v685_v2 = vpop.eup %684  ;;  %v649_v3 = vadd.f32 -1.0, %v683_v1 }
 0x67f   :  { %v650_v4 = vadd.f32 -1.0, %v685_v2 }
 0x680   :  { %v498_v6 = vsel %vm490_vm9, %v488_v61, %v649_v3 }
 0x681   :  { %v499_v7 = vsel %vm491_vm10, %v489_v62, %v650_v4  ;;  %508 = vrot.lane.b32.xlu0 %v498_v6, %s783_s23 }
 0x682   :  { %502 = vrot.lane.b32.xlu1 %v499_v7, %s782_s22 }
 0x689   :  { %510 = vrot.lane.b32.xlu0 %v499_v7, %s783_s23 }
 0x691   :  { %500 = vrot.lane.b32.xlu0 %v498_v6, %s782_s22 }
 0x699   :  { %520 = vperm.xlu0 %667, %v517_v8  }
 0x6f3   :  { %v509_v9 = vpop.permute.xlu0 %508 }
 0x6f4   :  { %v503_v14 = vpop.permute.xlu1 %502 }
 0x6fb   :  { %v511_v10 = vpop.permute.xlu0 %510 }
 0x6fc   :  { %v512_v11 = vsel %vm105_vm1, %v509_v9, %v511_v10  ;;  %v513_v12 = vsel %vm105_vm1, %v511_v10, %v509_v9  ;;  %vm570_vm1 = vcmask 1043456  }
 0x6fd   :  { %651 = vmatpush.msk.msrb.mxu2 %vm931_vm3, %v512_v11  ;;  %654 = vmatpush.msk.msrb.mxu3 %vm931_vm3, %v513_v12  ;;  %vm584_vm3 = vcmask 0  }
 0x6ff   :  { %540 = vmatpush.msrb.mxu2 %v498_v6  ;;  %560 = vmatpush.msrb.mxu3 %v499_v7 }
 0x703   :  { %v501_v15 = vpop.permute.xlu0 %500 }
 0x704   :  { %v505_v17 = vsel %vm139_vm4, %v503_v14, %v501_v15  ;;  %v504_v18 = vsel %vm139_vm4, %v501_v15, %v503_v14 }
 0x705   :  { %652 = vmatpush.msk.msrb.mxu2 %vm944_vm5, %v505_v17  ;;  %655 = vmatpush.msk.msrb.mxu3 %vm944_vm5, %v504_v18 }
 0x706   :  { %653 = vmatmul.msk.f32.vlgmr.msrb.gmra.mxu2 %vm165_vm6, %v516_v16  ;;  %656 = vmatmul.msk.f32.vlgmr.msrb.gmra.mxu3 %vm165_vm6, %v516_v16 }
 0x70b   :  { %v521_v31 = vpop.permute.xlu0 %520 }
 0x789   :  { %v543_v19 = vpop.f32.mrf.mxu2  ;;  %v563_v20 = vpop.f32.mrf.mxu3 }
 0x78a   :  { %v544_v21 = vadd.f32 %v543_v19, %v521_v31  ;;  %v564_v22 = vadd.f32 %v563_v20, %v521_v31 }
 0x78c   :  { %v566_v23 = vsub.f32 %v544_v21, %v906_v5  ;;  %v567_v24 = vsub.f32 %v564_v22, %v914_v13  ;;  %v588_v25 = vrot.slane %v564_v22, 4 }
 0x78e   :  { %v568_v26 = vmul.f32 %v566_v23, %v566_v23  ;;  %v569_v27 = vmul.f32 %v567_v24, %v567_v24  ;;  %v589_v36 = vsel %vm570_vm1, %v544_v21, %v588_v25 }
 0x78f   :  { %591 = vst [vmem:[#allocation8] sm:$0xff] %v589_v36 }
 0x790   :  { %v571_v28 = vsel %vm570_vm1, %v568_v26, 0.0  ;;  %v572_v29 = vsel %vm570_vm1, %v569_v27, 0.0  ;;  %602 = dma.vmem_to_hbm [thread:$0]  %s598_s25, 128, %s600_s2, [#allocation3]  }
 0x791   :  { %v573_v30 = vadd.f32 %v572_v29, %v571_v28 }
 0x793   :  { %574 = vadd.xlane.f32.xlu1 %v573_v30 }
 0x806   :  { %v575_v5 = vpop.xlane.xlu1 %574 }
 0x807   :  { %v576_v13 = vsel %vm570_vm1, %v575_v5, 0.0 }
 0x808   :  { %v577_v32 = vrot.slane %v576_v13, 4 }
 0x80a   :  { %v578_v33 = vadd.f32 %v577_v32, %v576_v13 }
 0x80c   :  { %v579_v34 = vrot.slane %v578_v33, 2 }
 0x80e   :  { %v580_v35 = vadd.f32 %v579_v34, %v578_v33 }
 0x810   :  { %v581_v37 = vrot.slane %v580_v35, 1 }
 0x812   :  { %v582_v38 = vadd.f32 %v581_v37, %v580_v35 }
 0x814   :  { %v583_v39 = vmul.f32 0.0009765625, %v582_v38 }
 0x816   :  { %585 = vst.msk [vmem:[#allocation9] sm:$0x1] %vm584_vm3, %v583_v39 }
 0x817   :  { %613 = dma.vmem_to_hbm [thread:$0]  %s609_s3, 16, %s611_s19, [#allocation10]  }
 0x818   :  { %774 = dma.done.wait [#allocation3], 128  }
 0x819   :  { %775 = vsyncadd [#allocation3], 4294967168 }
 0x81a   :  { %776 = dma.done.wait [#allocation10], 16  }
 0x81b   :  { %777 = vsyncadd [#allocation10], 4294967280 }
 0x81c   :  { %622 = vsyncpa [#allocation3], 1 }
 0x81d   :  { %623 = vsyncpa [#allocation10], 1 }
 0x81e   :  { %624 = vsyncpa [#allocation4], 1 }
 0x81f   :  { %625 = vsyncpa [#allocation6], 1 }

</bundles_post_ra>
